<compile_context>
chip_gen: v7x
topology: tpu7x:2x2x1
jax: 0.10.0
libtpu: 0.0.40
codegen_flags: <defaults>
</compile_context>

<pallas_src>
import functools

import jax
import jax.numpy as jnp
from jax.experimental import pallas as pl
from jax.experimental.pallas import tpu as pltpu

EPS = 1e-5

HID1, HID2, HID3, HID_OUT = 32, 16, 8, 1
OUT_PAD = 128   # fc4 output padded to one full lane width -> unmasked stores


def _round_up(x, m):
    return (x + m - 1) // m * m


def _fold_bn(w, b, gamma, beta, mean, var):
    """Fold eval-mode BatchNorm (running stats) into the preceding Linear."""
    scale = gamma * jax.lax.rsqrt(var + EPS)          # [1, C]
    return w * scale, (b - mean) * scale + beta


def regression_head_kernel(
    ids_ref, x_ref, side_ref,
    w1_ref, w2_ref, b2_ref, w3_ref, b3_ref, w4_ref, b4_ref,
    out_ref, acc_ref, cnt_ref,
):
    k = pl.program_id(1)
    tb, tn = acc_ref.shape[0], ids_ref.shape[1]

    @pl.when(k == 0)
    def _init():
        acc_ref[...] = jnp.zeros_like(acc_ref)
        cnt_ref[...] = jnp.zeros_like(cnt_ref)

    # Segment-membership mask built in-kernel (VPU compare, free under MXU/DMA).
    # Graph id handled by sublane r of this batch tile is i*tb + r; padded
    # nodes carry id -1 and never match.
    row_ids = (jax.lax.broadcasted_iota(jnp.int32, (tb, tn), 0)
               + pl.program_id(0) * tb)
    hit = row_ids == ids_ref[...]                              # (tb, tn) bool
    # Exact 0/1 bf16 mask -> segment sums accumulated in f32.
    acc_ref[...] += jnp.dot(hit.astype(x_ref.dtype), x_ref[...],
                            preferred_element_type=jnp.float32)
    cnt_ref[...] += jnp.sum(hit.astype(jnp.float32), axis=-1, keepdims=True)

    @pl.when(k == pl.num_programs(1) - 1)
    def _finalize():
        # Exact f32 mean (padded graph rows have count 0 -> clamp to 1).
        pooled = acc_ref[...] / jnp.maximum(cnt_ref[...], 1.0)
        # fc1 (BN folded): pooled block + precomputed (cat|num) term, then ReLU.
        z = jnp.dot(pooled, w1_ref[...],
                    preferred_element_type=jnp.float32) + side_ref[...]
        z = jnp.maximum(z, 0.0)
        # fc2 (BN folded) -> ReLU
        z = jnp.dot(z, w2_ref[...], preferred_element_type=jnp.float32) + b2_ref[...]
        z = jnp.maximum(z, 0.0)
        # fc3 (BN folded) -> ReLU
        z = jnp.dot(z, w3_ref[...], preferred_element_type=jnp.float32) + b3_ref[...]
        z = jnp.maximum(z, 0.0)
        # fc4 (lane-padded to 128 cols) -> ReLU
        z = jnp.dot(z, w4_ref[...], preferred_element_type=jnp.float32) + b4_ref[...]
        out_ref[...] = jnp.maximum(z, 0.0)


@functools.partial(jax.jit, static_argnames=("node_tile",))
def regression_forward(x_nodes, batch, categorical, numerical, params, *,
                       node_tile=512):
    """x_nodes: [N, D] graph-model output; batch: [N] int graph ids in [0, B);
    categorical: [B, Cc]; numerical: [B, Cn]."""
    N, D = x_nodes.shape
    B = categorical.shape[0]

    # ---- trace-time preprocessing (cheap, pooling-independent) ----
    w1f, b1f = _fold_bn(params["w1"], params["b1"], *params["bn1"])
    w2f, b2f = _fold_bn(params["w2"], params["b2"], *params["bn2"])
    w3f, b3f = _fold_bn(params["w3"], params["b3"], *params["bn3"])
    w4, b4 = params["w4"], params["b4"]

    w1p = w1f[:D]                                     # W1 block hitting pooled features
    w1cn = w1f[D:]                                    # W1 block hitting [cat | num]
    side = (jnp.concatenate([categorical, numerical], axis=1).astype(jnp.float32)
            @ w1cn + b1f)                             # [B, 32]

    # Lane-dense final store: pad fc4 to 128 output columns (extra cols zero).
    w4p = jnp.pad(w4, ((0, 0), (0, OUT_PAD - HID_OUT)))
    b4p = jnp.pad(b4, ((0, 0), (0, OUT_PAD - HID_OUT)))

    # ---- tiling / padding ----
    # Node tile: multiple of 128; default 512 (near HBM roofline), with a
    # small-problem fast path that collapses the reduction to a single step.
    # v6e can take 1024-2048 here; v5e saturates ~512.
    tn = _round_up(min(node_tile, _round_up(N, 128)), 128)
    Np = _round_up(N, tn)

    # Batch tile: multiple of 16 (bf16 sublane packing). If one tile would
    # cover the whole batch, split it so both v7x TensorCores get a "parallel"
    # grid step.
    tb = min(_round_up(B, 16), 256)
    if B > 16 and _round_up(B, tb) // tb < 2:
        tb = _round_up((B + 1) // 2, 16)
    Bp = _round_up(B, tb)

    ids_pad = jnp.pad(batch.astype(jnp.int32).reshape(1, N),
                      ((0, 0), (0, Np - N)), constant_values=-1)
    x_pad = jnp.pad(x_nodes, ((0, Np - N), (0, 0))).astype(jnp.bfloat16)
    side_pad = jnp.pad(side, ((0, Bp - B), (0, 0)))

    grid = (Bp // tb, Np // tn)
    n_btiles = grid[0]

    mlp_flops = 2 * Bp * (D * HID1 + HID1 * HID2 + HID2 * HID3 + HID3 * OUT_PAD)
    cost = pl.CostEstimate(
        flops=int(2 * Bp * Np * D + mlp_flops),
        transcendentals=0,
        bytes_accessed=int(
            n_btiles * Np * (D * 2 + 4)              # x (bf16) + ids, re-read per batch tile
            + side_pad.size * 4
            + (w1p.size + w2f.size + w3f.size + w4p.size
               + b2f.size + b3f.size + b4p.size) * 4
            + Bp * OUT_PAD * 4),
    )

    out = pl.pallas_call(
        regression_head_kernel,
        out_shape=jax.ShapeDtypeStruct((Bp, OUT_PAD), jnp.float32),
        grid_spec=pltpu.PrefetchScalarGridSpec(
            num_scalar_prefetch=0,
            grid=grid,
            in_specs=[
                pl.BlockSpec((1, tn), lambda i, k: (0, k)),          # node -> graph ids
                pl.BlockSpec((tn, D), lambda i, k: (k, 0)),          # node features (bf16)
                pl.BlockSpec((tb, HID1), lambda i, k: (i, 0)),       # fc1 side term
                pl.BlockSpec((D, HID1), lambda i, k: (0, 0)),        # W1 (pooled block)
                pl.BlockSpec((HID1, HID2), lambda i, k: (0, 0)),     # W2'
                pl.BlockSpec((1, HID2), lambda i, k: (0, 0)),        # b2'
                pl.BlockSpec((HID2, HID3), lambda i, k: (0, 0)),     # W3'
                pl.BlockSpec((1, HID3), lambda i, k: (0, 0)),        # b3'
                pl.BlockSpec((HID3, OUT_PAD), lambda i, k: (0, 0)),  # W4 (lane-padded)
                pl.BlockSpec((1, OUT_PAD), lambda i, k: (0, 0)),     # b4 (lane-padded)
            ],
            out_specs=pl.BlockSpec((tb, OUT_PAD), lambda i, k: (i, 0)),
            scratch_shapes=[pltpu.VMEM((tb, D), jnp.float32),        # segment-sum acc
                            pltpu.VMEM((tb, 1), jnp.float32)],       # per-graph counts
        ),
        compiler_params=pltpu.CompilerParams(
            dimension_semantics=("parallel", "arbitrary"),
            vmem_limit_bytes=32 * 1024 * 1024,                       # v5e scoped default is 16 MiB
        ),
        cost_estimate=cost,
    )(ids_pad, x_pad, side_pad, w1p, w2f, b2f, w3f, b3f, w4p, b4p)

    return out[:B, :HID_OUT]


def init_params(key, d_pool, c_cat, c_num):
    """Deterministic synthetic parameters. Linear weights stored as [in, out]."""
    dims_in = d_pool + c_cat + c_num
    sizes = [(dims_in, HID1), (HID1, HID2), (HID2, HID3), (HID3, HID_OUT)]
    ki = iter(jax.random.split(key, 24))

    def lin(shape):
        w = jax.random.normal(next(ki), shape, jnp.float32) / jnp.sqrt(shape[0])
        b = jax.random.normal(next(ki), (1, shape[1]), jnp.float32) * 0.1
        return w, b

    def bn(c):
        gamma = 1.0 + 0.05 * jax.random.normal(next(ki), (1, c), jnp.float32)
        beta = 0.05 * jax.random.normal(next(ki), (1, c), jnp.float32)
        mean = 0.1 * jax.random.normal(next(ki), (1, c), jnp.float32)
        var = jnp.ones((1, c), jnp.float32)
        return gamma, beta, mean, var

    w1, b1 = lin(sizes[0])
    w2, b2 = lin(sizes[1])
    w3, b3 = lin(sizes[2])
    w4, b4 = lin(sizes[3])

    return dict(
        w1=w1, b1=b1, bn1=bn(HID1),
        w2=w2, b2=b2, bn2=bn(HID2),
        w3=w3, b3=b3, bn3=bn(HID3),
        w4=w4, b4=b4,
    )


def reference_forward(x_nodes, batch, categorical, numerical, params):
    """Plain-JAX f32 reference (raw params, explicit eval-mode BN)."""
    B = categorical.shape[0]
    onehot = jnp.transpose(jax.nn.one_hot(batch, B, dtype=jnp.float32))
    pooled = (onehot @ x_nodes) / jnp.maximum(onehot.sum(1, keepdims=True), 1.0)
    h = jnp.concatenate([pooled, categorical, numerical], axis=1)

    def bn(z, g, b, m, v):
        return (z - m) * (g * jax.lax.rsqrt(v + EPS)) + b

    z = jnp.maximum(bn(h @ params["w1"] + params["b1"], *params["bn1"]), 0.0)
    z = jnp.maximum(bn(z @ params["w2"] + params["b2"], *params["bn2"]), 0.0)
    z = jnp.maximum(bn(z @ params["w3"] + params["b3"], *params["bn3"]), 0.0)
    return jnp.maximum(z @ params["w4"] + params["b4"], 0.0)


if __name__ == "__main__":
    key = jax.random.PRNGKey(0)
    k_x, k_cat, k_num, k_p = jax.random.split(key, 4)

    N_NODES, D_POOL = 256, 16           # graph_model per-node output dim
    B_GRAPHS, C_CAT, C_NUM = 8, 4, 4    # fc1 input_dim = 16 + 4 + 4 = 24

    x_nodes = jax.random.normal(k_x, (N_NODES, D_POOL), jnp.float32)
    batch = jnp.repeat(jnp.arange(B_GRAPHS, dtype=jnp.int32),
                       N_NODES // B_GRAPHS)
    categorical = jax.random.normal(k_cat, (B_GRAPHS, C_CAT), jnp.float32)
    numerical = jax.random.normal(k_num, (B_GRAPHS, C_NUM), jnp.float32)
    params = init_params(k_p, D_POOL, C_CAT, C_NUM)

    out = regression_forward(x_nodes, batch, categorical, numerical, params)
    out = jax.block_until_ready(out)

    ref = reference_forward(x_nodes, batch, categorical, numerical, params)
    assert out.shape == (B_GRAPHS, 1)
    # Exact 0/1 mask + f32 mean in-kernel; only bf16 rounding of x_nodes remains.
    assert jnp.allclose(out, ref, atol=1e-2, rtol=1e-2), (out, ref)

    print("KERNEL_OK")
</pallas_src>

<mosaic_0001>
module attributes {stable_mosaic.version = 11 : i64} {
  func.func @regression_head_kernel(%arg0: i32, %arg1: i32, %arg2: memref<1x256xi32, #tpu.memory_space<vmem>>, %arg3: memref<256x16xbf16, #tpu.memory_space<vmem>>, %arg4: memref<16x32xf32, #tpu.memory_space<vmem>>, %arg5: memref<16x32xf32, #tpu.memory_space<vmem>>, %arg6: memref<32x16xf32, #tpu.memory_space<vmem>>, %arg7: memref<1x16xf32, #tpu.memory_space<vmem>>, %arg8: memref<16x8xf32, #tpu.memory_space<vmem>>, %arg9: memref<1x8xf32, #tpu.memory_space<vmem>>, %arg10: memref<8x128xf32, #tpu.memory_space<vmem>>, %arg11: memref<1x128xf32, #tpu.memory_space<vmem>>, %arg12: memref<16x128xf32, #tpu.memory_space<vmem>>, %arg13: memref<16x16xf32, #tpu.memory_space<vmem>>, %arg14: memref<16x1xf32, #tpu.memory_space<vmem>>) attributes {dimension_semantics = [#tpu.dimension_semantics<parallel>, #tpu.dimension_semantics<arbitrary>], iteration_bounds = array<i64: 1, 1>, scalar_prefetch = 0 : i64, scratch_operands = 2 : i64, tpu.core_type = #tpu.core_type<tc>, window_params = [{transform_indices = @transform_0, window_bounds = array<i64: 1, 256>}, {transform_indices = @transform_1, window_bounds = array<i64: 256, 16>}, {transform_indices = @transform_2, window_bounds = array<i64: 16, 32>}, {pipeline_mode = #tpu.pipeline_mode<synchronous>, transform_indices = @transform_3, window_bounds = array<i64: 16, 32>}, {pipeline_mode = #tpu.pipeline_mode<synchronous>, transform_indices = @transform_4, window_bounds = array<i64: 32, 16>}, {pipeline_mode = #tpu.pipeline_mode<synchronous>, transform_indices = @transform_5, window_bounds = array<i64: 1, 16>}, {pipeline_mode = #tpu.pipeline_mode<synchronous>, transform_indices = @transform_6, window_bounds = array<i64: 16, 8>}, {pipeline_mode = #tpu.pipeline_mode<synchronous>, transform_indices = @transform_7, window_bounds = array<i64: 1, 8>}, {pipeline_mode = #tpu.pipeline_mode<synchronous>, transform_indices = @transform_8, window_bounds = array<i64: 8, 128>}, {pipeline_mode = #tpu.pipeline_mode<synchronous>, transform_indices = @transform_9, window_bounds = array<i64: 1, 128>}, {transform_indices = @transform_10, window_bounds = array<i64: 16, 128>}]} {
    %c0_i32 = arith.constant 0 : i32
    %0 = arith.cmpi eq, %arg1, %c0_i32 : i32
    %1 = arith.extui %0 : i1 to i32
    %c0_i32_0 = arith.constant 0 : i32
    %2 = arith.cmpi ne, %1, %c0_i32_0 : i32
    scf.if %2 {
      %cst_15 = arith.constant 0.000000e+00 : f32
      %28 = vector.broadcast %cst_15 : f32 to vector<16x16xf32>
      %c0_16 = arith.constant 0 : index
      %c0_17 = arith.constant 0 : index
      %29 = vector.load %arg13[%c0_16, %c0_17] : memref<16x16xf32, #tpu.memory_space<vmem>>, vector<16x16xf32>
      tpu.vector_store %arg13[%c0_16, %c0_17], %28 {strides = array<i32>} : memref<16x16xf32, #tpu.memory_space<vmem>>, vector<16x16xf32>,
      %cst_18 = arith.constant 0.000000e+00 : f32
      %30 = vector.broadcast %cst_18 : f32 to vector<16x1xf32>
      %c0_19 = arith.constant 0 : index
      %c0_20 = arith.constant 0 : index
      %31 = vector.load %arg14[%c0_19, %c0_20] : memref<16x1xf32, #tpu.memory_space<vmem>>, vector<16x1xf32>
      tpu.vector_store %arg14[%c0_19, %c0_20], %30 {strides = array<i32>} : memref<16x1xf32, #tpu.memory_space<vmem>>, vector<16x1xf32>,
    } else {
    }
    %3 = tpu.iota {dimensions = array<i32: 0>} : vector<16x256xi32>
    %c16_i32 = arith.constant 16 : i32
    %4 = arith.muli %arg0, %c16_i32 : i32
    %5 = vector.broadcast %4 : i32 to vector<16x256xi32>
    %6 = arith.addi %3, %5 : vector<16x256xi32>
    %c0 = arith.constant 0 : index
    %c0_1 = arith.constant 0 : index
    %7 = vector.load %arg2[%c0, %c0_1] : memref<1x256xi32, #tpu.memory_space<vmem>>, vector<1x256xi32>
    %8 = vector.broadcast %7 : vector<1x256xi32> to vector<16x256xi32>
    %9 = arith.cmpi eq, %6, %8 : vector<16x256xi32>
    %c0_2 = arith.constant 0 : index
    %c0_3 = arith.constant 0 : index
    %10 = vector.load %arg13[%c0_2, %c0_3] : memref<16x16xf32, #tpu.memory_space<vmem>>, vector<16x16xf32>
    %11 = arith.extui %9 : vector<16x256xi1> to vector<16x256xi32>
    %12 = arith.sitofp %11 : vector<16x256xi32> to vector<16x256xf32>
    %13 = arith.truncf %12 : vector<16x256xf32> to vector<16x256xbf16>
    %c0_4 = arith.constant 0 : index
    %c0_5 = arith.constant 0 : index
    %14 = vector.load %arg3[%c0_4, %c0_5] : memref<256x16xbf16, #tpu.memory_space<vmem>>, vector<256x16xbf16>
    %cst = arith.constant dense<0.000000e+00> : vector<16x16xf32>
    %15 = tpu.matmul %13, %14, %cst {dimension_numbers = #tpu.dot_dimension_numbers<[1], [0], [0], [1], [0, 0, 1, 1], [], []>} : vector<16x256xbf16>, vector<256x16xbf16>, vector<16x16xf32> -> vector<16x16xf32>
    %16 = arith.addf %10, %15 : vector<16x16xf32>
    %c0_6 = arith.constant 0 : index
    %c0_7 = arith.constant 0 : index
    %17 = vector.load %arg13[%c0_6, %c0_7] : memref<16x16xf32, #tpu.memory_space<vmem>>, vector<16x16xf32>
    tpu.vector_store %arg13[%c0_6, %c0_7], %16 {strides = array<i32>} : memref<16x16xf32, #tpu.memory_space<vmem>>, vector<16x16xf32>,
    %c0_8 = arith.constant 0 : index
    %c0_9 = arith.constant 0 : index
    %18 = vector.load %arg14[%c0_8, %c0_9] : memref<16x1xf32, #tpu.memory_space<vmem>>, vector<16x1xf32>
    %19 = arith.extui %9 : vector<16x256xi1> to vector<16x256xi32>
    %20 = arith.sitofp %19 : vector<16x256xi32> to vector<16x256xf32>
    %cst_10 = arith.constant dense<0.000000e+00> : vector<16xf32>
    %21 = vector.multi_reduction <add>, %20, %cst_10 [1] : vector<16x256xf32> to vector<16xf32>
    %22 = vector.shape_cast %21 : vector<16xf32> to vector<16x1xf32>
    %23 = arith.addf %18, %22 : vector<16x1xf32>
    %c0_11 = arith.constant 0 : index
    %c0_12 = arith.constant 0 : index
    %24 = vector.load %arg14[%c0_11, %c0_12] : memref<16x1xf32, #tpu.memory_space<vmem>>, vector<16x1xf32>
    tpu.vector_store %arg14[%c0_11, %c0_12], %23 {strides = array<i32>} : memref<16x1xf32, #tpu.memory_space<vmem>>, vector<16x1xf32>,
    %c0_i32_13 = arith.constant 0 : i32
    %25 = arith.cmpi eq, %arg1, %c0_i32_13 : i32
    %26 = arith.extui %25 : i1 to i32
    %c0_i32_14 = arith.constant 0 : i32
    %27 = arith.cmpi ne, %26, %c0_i32_14 : i32
    scf.if %27 {
      %c0_15 = arith.constant 0 : index
      %c0_16 = arith.constant 0 : index
      %28 = vector.load %arg13[%c0_15, %c0_16] : memref<16x16xf32, #tpu.memory_space<vmem>>, vector<16x16xf32>
      %c0_17 = arith.constant 0 : index
      %c0_18 = arith.constant 0 : index
      %29 = vector.load %arg14[%c0_17, %c0_18] : memref<16x1xf32, #tpu.memory_space<vmem>>, vector<16x1xf32>
      %cst_19 = arith.constant 1.000000e+00 : f32
      %30 = vector.broadcast %cst_19 : f32 to vector<16x1xf32>
      %31 = arith.maximumf %29, %30 : vector<16x1xf32>
      %32 = vector.broadcast %31 : vector<16x1xf32> to vector<16x16xf32>
      %33 = arith.divf %28, %32 : vector<16x16xf32>
      %c0_20 = arith.constant 0 : index
      %c0_21 = arith.constant 0 : index
      %34 = vector.load %arg5[%c0_20, %c0_21] : memref<16x32xf32, #tpu.memory_space<vmem>>, vector<16x32xf32>
      %cst_22 = arith.constant dense<0.000000e+00> : vector<16x32xf32>
      %35 = tpu.matmul %33, %34, %cst_22 {dimension_numbers = #tpu.dot_dimension_numbers<[1], [0], [0], [1], [0, 0, 1, 1], [], []>} : vector<16x16xf32>, vector<16x32xf32>, vector<16x32xf32> -> vector<16x32xf32>
      %c0_23 = arith.constant 0 : index
      %c0_24 = arith.constant 0 : index
      %36 = vector.load %arg4[%c0_23, %c0_24] : memref<16x32xf32, #tpu.memory_space<vmem>>, vector<16x32xf32>
      %37 = arith.addf %35, %36 : vector<16x32xf32>
      %cst_25 = arith.constant 0.000000e+00 : f32
      %38 = vector.broadcast %cst_25 : f32 to vector<16x32xf32>
      %39 = arith.maximumf %37, %38 : vector<16x32xf32>
      %c0_26 = arith.constant 0 : index
      %c0_27 = arith.constant 0 : index
      %40 = vector.load %arg6[%c0_26, %c0_27] : memref<32x16xf32, #tpu.memory_space<vmem>>, vector<32x16xf32>
      %cst_28 = arith.constant dense<0.000000e+00> : vector<16x16xf32>
      %41 = tpu.matmul %39, %40, %cst_28 {dimension_numbers = #tpu.dot_dimension_numbers<[1], [0], [0], [1], [0, 0, 1, 1], [], []>} : vector<16x32xf32>, vector<32x16xf32>, vector<16x16xf32> -> vector<16x16xf32>
      %c0_29 = arith.constant 0 : index
      %c0_30 = arith.constant 0 : index
      %42 = vector.load %arg7[%c0_29, %c0_30] : memref<1x16xf32, #tpu.memory_space<vmem>>, vector<1x16xf32>
      %43 = vector.broadcast %42 : vector<1x16xf32> to vector<16x16xf32>
      %44 = arith.addf %41, %43 : vector<16x16xf32>
      %cst_31 = arith.constant 0.000000e+00 : f32
      %45 = vector.broadcast %cst_31 : f32 to vector<16x16xf32>
      %46 = arith.maximumf %44, %45 : vector<16x16xf32>
      %c0_32 = arith.constant 0 : index
      %c0_33 = arith.constant 0 : index
      %47 = vector.load %arg8[%c0_32, %c0_33] : memref<16x8xf32, #tpu.memory_space<vmem>>, vector<16x8xf32>
      %cst_34 = arith.constant dense<0.000000e+00> : vector<16x8xf32>
      %48 = tpu.matmul %46, %47, %cst_34 {dimension_numbers = #tpu.dot_dimension_numbers<[1], [0], [0], [1], [0, 0, 1, 1], [], []>} : vector<16x16xf32>, vector<16x8xf32>, vector<16x8xf32> -> vector<16x8xf32>
      %c0_35 = arith.constant 0 : index
      %c0_36 = arith.constant 0 : index
      %49 = vector.load %arg9[%c0_35, %c0_36] : memref<1x8xf32, #tpu.memory_space<vmem>>, vector<1x8xf32>
      %50 = vector.broadcast %49 : vector<1x8xf32> to vector<16x8xf32>
      %51 = arith.addf %48, %50 : vector<16x8xf32>
      %cst_37 = arith.constant 0.000000e+00 : f32
      %52 = vector.broadcast %cst_37 : f32 to vector<16x8xf32>
      %53 = arith.maximumf %51, %52 : vector<16x8xf32>
      %c0_38 = arith.constant 0 : index
      %c0_39 = arith.constant 0 : index
      %54 = vector.load %arg10[%c0_38, %c0_39] : memref<8x128xf32, #tpu.memory_space<vmem>>, vector<8x128xf32>
      %cst_40 = arith.constant dense<0.000000e+00> : vector<16x128xf32>
      %55 = tpu.matmul %53, %54, %cst_40 {dimension_numbers = #tpu.dot_dimension_numbers<[1], [0], [0], [1], [0, 0, 1, 1], [], []>} : vector<16x8xf32>, vector<8x128xf32>, vector<16x128xf32> -> vector<16x128xf32>
      %c0_41 = arith.constant 0 : index
      %c0_42 = arith.constant 0 : index
      %56 = vector.load %arg11[%c0_41, %c0_42] : memref<1x128xf32, #tpu.memory_space<vmem>>, vector<1x128xf32>
      %57 = vector.broadcast %56 : vector<1x128xf32> to vector<16x128xf32>
      %58 = arith.addf %55, %57 : vector<16x128xf32>
      %cst_43 = arith.constant 0.000000e+00 : f32
      %59 = vector.broadcast %cst_43 : f32 to vector<16x128xf32>
      %60 = arith.maximumf %58, %59 : vector<16x128xf32>
      %c0_44 = arith.constant 0 : index
      %c0_45 = arith.constant 0 : index
      %61 = vector.load %arg12[%c0_44, %c0_45] : memref<16x128xf32, #tpu.memory_space<vmem>>, vector<16x128xf32>
      tpu.vector_store %arg12[%c0_44, %c0_45], %60 {strides = array<i32>} : memref<16x128xf32, #tpu.memory_space<vmem>>, vector<16x128xf32>,
    } else {
    }
    return
  }
  func.func @transform_0(%arg0: i32, %arg1: i32) -> (i32, i32) {
    %c0_i32 = arith.constant 0 : i32
    %c0_i32_0 = arith.constant 0 : i32
    return %c0_i32, %arg1 : i32, i32
  }
  func.func @transform_1(%arg0: i32, %arg1: i32) -> (i32, i32) {
    %c0_i32 = arith.constant 0 : i32
    %c0_i32_0 = arith.constant 0 : i32
    return %arg1, %c0_i32 : i32, i32
  }
  func.func @transform_2(%arg0: i32, %arg1: i32) -> (i32, i32) {
    %c0_i32 = arith.constant 0 : i32
    %c0_i32_0 = arith.constant 0 : i32
    return %arg0, %c0_i32 : i32, i32
  }
  func.func @transform_3(%arg0: i32, %arg1: i32) -> (i32, i32) {
    %c0_i32 = arith.constant 0 : i32
    %c0_i32_0 = arith.constant 0 : i32
    %c0_i32_1 = arith.constant 0 : i32
    return %c0_i32, %c0_i32_0 : i32, i32
  }
  func.func @transform_4(%arg0: i32, %arg1: i32) -> (i32, i32) {
    %c0_i32 = arith.constant 0 : i32
    %c0_i32_0 = arith.constant 0 : i32
    %c0_i32_1 = arith.constant 0 : i32
    return %c0_i32, %c0_i32_0 : i32, i32
  }
  func.func @transform_5(%arg0: i32, %arg1: i32) -> (i32, i32) {
    %c0_i32 = arith.constant 0 : i32
    %c0_i32_0 = arith.constant 0 : i32
    %c0_i32_1 = arith.constant 0 : i32
    return %c0_i32, %c0_i32_0 : i32, i32
  }
  func.func @transform_6(%arg0: i32, %arg1: i32) -> (i32, i32) {
    %c0_i32 = arith.constant 0 : i32
    %c0_i32_0 = arith.constant 0 : i32
    %c0_i32_1 = arith.constant 0 : i32
    return %c0_i32, %c0_i32_0 : i32, i32
  }
  func.func @transform_7(%arg0: i32, %arg1: i32) -> (i32, i32) {
    %c0_i32 = arith.constant 0 : i32
    %c0_i32_0 = arith.constant 0 : i32
    %c0_i32_1 = arith.constant 0 : i32
    return %c0_i32, %c0_i32_0 : i32, i32
  }
  func.func @transform_8(%arg0: i32, %arg1: i32) -> (i32, i32) {
    %c0_i32 = arith.constant 0 : i32
    %c0_i32_0 = arith.constant 0 : i32
    %c0_i32_1 = arith.constant 0 : i32
    return %c0_i32, %c0_i32_0 : i32, i32
  }
  func.func @transform_9(%arg0: i32, %arg1: i32) -> (i32, i32) {
    %c0_i32 = arith.constant 0 : i32
    %c0_i32_0 = arith.constant 0 : i32
    %c0_i32_1 = arith.constant 0 : i32
    return %c0_i32, %c0_i32_0 : i32, i32
  }
  func.func @transform_10(%arg0: i32, %arg1: i32) -> (i32, i32) {
    %c0_i32 = arith.constant 0 : i32
    %c0_i32_0 = arith.constant 0 : i32
    return %arg0, %c0_i32 : i32, i32
  }
}

</mosaic_0001>

<bundles_post_ra>
// kernel: regression_forward.1
= control target key start
LH: loop header
LB: loop body
LE: loop exit
PB: predicated region body
PF: predicated region fallthrough
CT: control target
= control target key end

     0   :  { %v46_v0 = vlaneseq  ;;  %vm43_vm0 = vcmask 7168   ;;  %v805_v2 = vmov 0.0   ;;  %v806_v26 = vmov 1.0|1.0   ;;  %s990_s0 = inlined_call_operand.vmem [shape: s32[1,256], index: 0, kind: input, shape index: {}]   ;;  %s991_s1 = inlined_call_operand.vmem [shape: bf16[256,16], index: 1, kind: input, shape index: {}]   ;;  %s992_s3 = inlined_call_operand.vmem [shape: f32[16,32], index: 3, kind: input, shape index: {}]   ;;  %s993_s4 = inlined_call_operand.vmem [shape: f32[32,16], index: 4, kind: input, shape index: {}]   ;;  %s994_s2 = inlined_call_operand.vmem [shape: f32[16,32], index: 2, kind: input, shape index: {}]   ;;  %s995_s6 = inlined_call_operand.vmem [shape: f32[16,8], index: 6, kind: input, shape index: {}]   ;;  %s996_s5 = inlined_call_operand.vmem [shape: f32[1,16], index: 5, kind: input, shape index: {}]   ;;  %s997_s8 = inlined_call_operand.vmem [shape: f32[8,128], index: 8, kind: input, shape index: {}]   ;;  %s998_s7 = inlined_call_operand.vmem [shape: f32[1,8], index: 7, kind: input, shape index: {}]   ;;  %s999_s9 = inlined_call_operand.vmem [shape: f32[1,128], index: 9, kind: input, shape index: {}]   ;;  %s1000_s10 = inlined_call_operand.vmem [shape: f32[16,128], index: 10, kind: output, shape index: {}]  }
   0x1   :  { %v53_v1 = vld [vmem:[%s990_s0] sm:$0x3]  ;;  %44 = vst.msk [vmem:[#allocation3] sm:$0xff] %vm43_vm0, %v805_v2  ;;  %45 = vst.msk [vmem:[#allocation3 + $0x8] sm:$0xff] %vm43_vm0, %v805_v2  ;;  %v787_v9 = vld [vmem:[%s991_s1 + $0x48] sm:$0xff]   ;;  %v807_v32 = vmov 0  }
   0x2   :  { %v47_v3 = vshrl.u32 %v46_v0, 7  ;;  %v785_v4 = vld [vmem:[%s991_s1 + $0x40] sm:$0xff]   ;;  %v788_v10 = vld [vmem:[%s991_s1 + $0x8] sm:$0xff]   ;;  %v789_v13 = vld [vmem:[%s991_s1 + $0x50] sm:$0xff]   ;;  %783 = vset.pattern.permute.xlu1 %v807_v32  ;;  %784 = vset.pattern.permute.xlu0 %v807_v32  ;;  %vm40_vm7 = vcmask 130048   ;;  %vm386_vm8 = vcmask 261120  }
   0x3   :  { %v786_v5 = vld [vmem:[%s991_s1] sm:$0xff]   ;;  %695 = vmatprep.subr.bf16.mxu0 %v785_v4  ;;  %v790_v14 = vld [vmem:[%s991_s1 + $0x10] sm:$0xff]   ;;  %v791_v20 = vld [vmem:[%s991_s1 + $0x58] sm:$0xff]   ;;  %41 = vst.msk [vmem:[#allocation2] sm:$0xff] %vm40_vm7, %v805_v2  ;;  %vm570_vm9 = vcmask 64512  }
   0x4   :  { %v48_v6 = vadd.s32 8, %v47_v3  ;;  %v56_v7 = vsub.s32 0, %v47_v3  ;;  %v60_v8 = vsub.s32 1, %v47_v3  ;;  %696 = vmatpush3.bf16.msra.mxu0 %v786_v5  ;;  %v792_v22 = vld [vmem:[%s991_s1 + $0x18] sm:$0xff]   ;;  %v793_v23 = vld [vmem:[%s991_s1 + $0x60] sm:$0xff]   ;;  %v795_v25 = vld [vmem:[%s991_s1 + $0x68] sm:$0xff]  }
   0x5   :  { %697 = vmatprep.subr.bf16.mxu0 %v787_v9  ;;  %v794_v24 = vld [vmem:[%s991_s1 + $0x20] sm:$0xff]   ;;  %v796_v27 = vld [vmem:[%s991_s1 + $0x28] sm:$0xff]   ;;  %v797_v28 = vld [vmem:[%s991_s1 + $0x70] sm:$0xff]   ;;  %42 = vst.msk [vmem:[#allocation2 + $0x8] sm:$0xff] %vm40_vm7, %v805_v2 }
   0x6   :  { %v57_v11 = vrot.slane %v53_v1, %v56_v7  ;;  %v61_v12 = vrot.slane %v53_v1, %v60_v8  ;;  %v798_v29 = vld [vmem:[%s991_s1 + $0x30] sm:$0xff]   ;;  %v799_v30 = vld [vmem:[%s991_s1 + $0x78] sm:$0xff]   ;;  %v288_v43 = vld [vmem:[%s992_s3] sm:$0xff] }
   0x7   :  { %v800_v31 = vld [vmem:[%s991_s1 + $0x38] sm:$0xff]   ;;  %v289_v44 = vld [vmem:[%s992_s3 + $0x8] sm:$0xff]  ;;  %v375_v46 = vld [vmem:[%s993_s4] sm:$0xff] }
   0x8   :  { %vm62_vm1 = vcmp.eq.s32.totalorder %v47_v3, %v57_v11  ;;  %vm63_vm2 = vcmp.eq.s32.totalorder %v47_v3, %v61_v12  ;;  %vm64_vm3 = vcmp.eq.s32.totalorder %v48_v6, %v57_v11  ;;  %vm65_vm4 = vcmp.eq.s32.totalorder %v48_v6, %v61_v12  ;;  %698 = vmatpush3.bf16.msra.mxu0 %v788_v10  ;;  %v252_v33 = vld [vmem:[#allocation3] sm:$0xff]  ;;  %v253_v36 = vld [vmem:[#allocation3 + $0x8] sm:$0xff]  ;;  %v376_v47 = vld [vmem:[%s993_s4 + $0x8] sm:$0xff] }
   0x9   :  { %v660_v15 = vsel %vm62_vm1, 1.0, %v805_v2  ;;  %v661_v16 = vsel %vm63_vm2, 1.0, %v805_v2  ;;  %v662_v17 = vsel %vm64_vm3, 1.0, %v805_v2  ;;  %v663_v18 = vsel %vm65_vm4, 1.0, %v805_v2  ;;  %699 = vmatprep.subr.bf16.mxu0 %v789_v13  ;;  %vm680_vm5 = vmpackc.low %vm65_vm4, %vm63_vm2  ;;  %v377_v3 = vld [vmem:[%s993_s4 + $0x10] sm:$0xff]  ;;  %v378_v4 = vld [vmem:[%s993_s4 + $0x18] sm:$0xff] }
   0xa   :  { %v254_v19 = vadd.f32 %v661_v16, %v660_v15  ;;  %v257_v21 = vadd.f32 %v663_v18, %v662_v17  ;;  %681 = vmatprep.mubr.msk.bf16.mxu0 %vm680_vm5, %v806_v26  ;;  %vm682_vm6 = vmpackc.low %vm64_vm3, %vm62_vm1  ;;  %v764_v45 = vpack.c.bf16 %v289_v44, %v288_v43  ;;  %v768_v48 = vpack.c.bf16 %v376_v47, %v375_v46  ;;  %v66_v50 = vld [vmem:[#allocation2] sm:$0xff]  ;;  %v291_v6 = vld [vmem:[%s994_s2 + $0x8] sm:$0xff] }
   0xb   :  { %v772_v5 = vpack.c.bf16 %v378_v4, %v377_v3  ;;  %v290_v7 = vld [vmem:[%s994_s2] sm:$0xff]  ;;  %v471_v15 = vld [vmem:[%s995_s6 + $0x8] sm:$0xff] }
   0xc   :  { %255 = vadd.xlane.f32.xlu0 %v254_v19  ;;  %700 = vmatpush3.bf16.msra.mxu0 %v790_v14  ;;  %v67_v54 = vld [vmem:[#allocation2 + $0x8] sm:$0xff]  ;;  %v470_v14 = vld [vmem:[%s995_s6] sm:$0xff] }
   0xd   :  { %701 = vmatprep.subr.bf16.mxu0 %v791_v20  ;;  %765 = vmatprep.subr.bf16.mxu1 %v764_v45  ;;  %v776_v16 = vpack.c.bf16 %v471_v15, %v470_v14  ;;  %v686_v17 = vld [vmem:[%s996_s5] ss:$0 sm:$0xff] }
   0xe   :  { %767 = vmatpush3.bf16.msra.mxu1 %v764_v45  ;;  %v692_v32 = vld [vmem:[%s999_s9] ss:$0 sm:$0xff] }
   0xf   :  { %769 = vmatprep.subr.bf16.mxu1 %v768_v48 }
  0x10   :  { %258 = vadd.xlane.f32.xlu0 %v257_v21  ;;  %702 = vmatpush3.bf16.msra.mxu0 %v792_v22 }
  0x11   :  { %703 = vmatprep.subr.bf16.mxu0 %v793_v23 }
  0x14   :  { %704 = vmatpush3.bf16.msra.mxu0 %v794_v24  ;;  %v562_v24 = vld [vmem:[%s997_s8] sm:$0xff] }
  0x15   :  { %705 = vmatprep.subr.bf16.mxu0 %v795_v25  ;;  %v689_v25 = vld [vmem:[%s998_s7] ss:$0 sm:$0xff] }
  0x18   :  { %706 = vmatpush3.bf16.msra.mxu0 %v796_v27 }
  0x19   :  { %707 = vmatprep.subr.bf16.mxu0 %v797_v28 }
  0x1c   :  { %708 = vmatpush3.bf16.msra.mxu0 %v798_v29 }
  0x1d   :  { %709 = vmatprep.subr.bf16.mxu0 %v799_v30 }
  0x20   :  { %710 = vmatpush3.bf16.msra.mxu0 %v800_v31 }
  0x23   :  { %683 = vmatmul.mubr.msk.bf16.vlgmr.msra.gmra.mrb[0].mxu0 %vm682_vm6, %v806_v26 }
  0x99   :  { %v256_v34 = vpop.xlane.xlu0 %255 }
  0x9a   :  { %v260_v35 = vadd.f32 %v256_v34, %v252_v33 }
  0x9c   :  { %263 = vst.msk [vmem:[#allocation3] sm:$0xff] %vm43_vm0, %v260_v35 }
  0x9d   :  { %v259_v37 = vpop.xlane.xlu0 %258 }
  0x9e   :  { %v261_v38 = vadd.f32 %v259_v37, %v253_v36 }
  0xa0   :  { %264 = vst.msk [vmem:[#allocation3 + $0x8] sm:$0xff] %vm43_vm0, %v261_v38 }
  0xa3   :  { %v270_v39 = vld [vmem:[#allocation3] sm:$0xff] }
  0xa4   :  { %v272_v40 = vmax.f32 %v270_v39, 1.0 }
  0xa6   :  { %276 = vperm.xlu1 %783, %v272_v40  }
  0xa7   :  { %v271_v41 = vld [vmem:[#allocation3 + $0x8] sm:$0xff] }
  0xa8   :  { %v273_v42 = vmax.f32 %v271_v41, 1.0 }
  0xaa   :  { %281 = vperm.xlu1 %783, %v273_v42  }
  0xf6   :  { %v711_v49 = vpop.f32.mrb[0].mxu0 }
  0xf7   :  { %v712_v51 = vpop.f32.mrb[1].mxu0 }
  0xf8   :  { %v713_v52 = vadd.f32 %v712_v51, %v711_v49  ;;  %v714_v53 = vpop.f32.mrb[2].mxu0 }
  0xf9   :  { %v715_v55 = vpop.f32.mrb[3].mxu0 }
  0xfa   :  { %v247_v56 = vadd.f32 %v713_v52, %v66_v50  ;;  %v716_v57 = vadd.f32 %v715_v55, %v714_v53 }
  0xfc   :  { %250 = vst.msk [vmem:[#allocation2] sm:$0xff] %vm40_vm7, %v247_v56  ;;  %v248_v58 = vadd.f32 %v716_v57, %v67_v54 }
  0xfe   :  { %251 = vst.msk [vmem:[#allocation2 + $0x8] sm:$0xff] %vm40_vm7, %v248_v58 }
 0x103   :  { %v268_v61 = vld [vmem:[#allocation2] sm:$0xff] }
 0x105   :  { %v269_v1 = vld [vmem:[#allocation2 + $0x8] sm:$0xff] }
 0x125   :  { %v277_v59 = vpop.permute.xlu1 %276 }
 0x126   :  { %801 = vrcp.f32 %v277_v59 }
 0x129   :  { %v282_v60 = vpop.permute.xlu1 %281 }
 0x12a   :  { %803 = vrcp.f32 %v282_v60 }
 0x130   :  { %v802_v62 = vpop.eup %801 }
 0x131   :  { %v285_v63 = vmul.f32 %v802_v62, %v268_v61 }
 0x133   :  { %738 = vmatprep.mubr.msk.f32.mxu1 %vm40_vm7, %v285_v63 }
 0x134   :  { %v804_v0 = vpop.eup %803 }
 0x135   :  { %v287_v2 = vmul.f32 %v804_v0, %v269_v1 }
 0x137   :  { %739 = vmatmul.mubr.msk.f32.vlgmr.msra.gmra.mrb[0].mxu1 %vm40_vm7, %v287_v2 }
 0x138   :  { %771 = vmatpush3.bf16.msra.mxu1 %v768_v48 }
 0x139   :  { %773 = vmatprep.subr.bf16.mxu1 %v772_v5 }
 0x13c   :  { %775 = vmatpush3.bf16.msra.mxu1 %v772_v5 }
 0x13d   :  { %777 = vmatprep.subr.bf16.mxu1 %v776_v16 }
 0x20a   :  { %v740_v8 = vpop.f32.mrb[0].mxu1 }
 0x20b   :  { %v370_v9 = vadd.f32 %v740_v8, %v291_v6  ;;  %v364_v10 = vpop.f32.mrb[1].mxu1 }
 0x20c   :  { %v365_v11 = vadd.f32 %v364_v10, %v290_v7 }
 0x20d   :  { %v374_v13 = vmax.f32 %v370_v9, 0.0 }
 0x20e   :  { %v373_v12 = vmax.f32 %v365_v11, 0.0 }
 0x210   :  { %749 = vmatprep.mubr.msk.f32.mxu1 %vm386_vm8, %v373_v12 }
 0x211   :  { %750 = vmatmul.mubr.msk.f32.vlgmr.msra.gmra.mrb[2].mxu1 %vm386_vm8, %v374_v13 }
 0x212   :  { %779 = vmatpush3.bf16.msra.mxu1 %v776_v16 }
 0x213   :  { %759 = vmatprep.subr.mxu1 %v562_v24 }
 0x2e4   :  { %v751_v18 = vpop.f32.mrb[2].mxu1 }
 0x2e5   :  { %v465_v19 = vadd.f32 %v751_v18, %v686_v17  ;;  %v459_v20 = vpop.f32.mrb[3].mxu1 }
 0x2e6   :  { %v460_v21 = vadd.f32 %v686_v17, %v459_v20 }
 0x2e7   :  { %v469_v23 = vmax.f32 %v465_v19, 0.0 }
 0x2e8   :  { %v468_v22 = vmax.f32 %v460_v21, 0.0 }
 0x2ea   :  { %756 = vmatprep.mubr.msk.f32.mxu1 %vm40_vm7, %v468_v22 }
 0x2eb   :  { %757 = vmatmul.mubr.msk.f32.vlgmr.msra.gmra.mrb[4].mxu1 %vm40_vm7, %v469_v23 }
 0x2ec   :  { %760 = vmatpush3.msra.mxu1 %v562_v24 }
 0x3be   :  { %v758_v26 = vpop.f32.mrb[4].mxu1 }
 0x3bf   :  { %v557_v27 = vadd.f32 %v758_v26, %v689_v25  ;;  %v551_v28 = vpop.f32.mrb[5].mxu1 }
 0x3c0   :  { %v552_v29 = vadd.f32 %v689_v25, %v551_v28 }
 0x3c1   :  { %v561_v31 = vmax.f32 %v557_v27, 0.0 }
 0x3c2   :  { %v560_v30 = vmax.f32 %v552_v29, 0.0 }
 0x3c4   :  { %761 = vmatprep.mubr.msk.f32.mxu1 %vm570_vm9, %v560_v30 }
 0x3c5   :  { %762 = vmatmul.mubr.msk.f32.vlgmr.msra.gmra.mrb[6].mxu1 %vm570_vm9, %v561_v31 }
 0x498   :  { %v763_v33 = vpop.f32.mrb[6].mxu1 }
 0x499   :  { %v649_v34 = vadd.f32 %v763_v33, %v692_v32  ;;  %v643_v35 = vpop.f32.mrb[7].mxu1 }
 0x49a   :  { %v644_v36 = vadd.f32 %v692_v32, %v643_v35 }
 0x49b   :  { %v653_v37 = vmax.f32 %v649_v34, 0.0 }
 0x49c   :  { %v652_v38 = vmax.f32 %v644_v36, 0.0 }
 0x49d   :  { %655 = vst [vmem:[%s1000_s10 + $0x8] sm:$0xff] %v653_v37 }
 0x49e   :  { %654 = vst [vmem:[%s1000_s10] sm:$0xff] %v652_v38 }

</bundles_post_ra>
